<compile_context>
chip_gen: v7x
topology: tpu7x:2x2x1
jax: 0.10.0
libtpu: 0.0.40
codegen_flags: <defaults>
</compile_context>

<pallas_src>
import functools

import jax
import jax.numpy as jnp
from jax.experimental import pallas as pl
from jax.experimental.pallas import tpu as pltpu


def _channel_attn_kernel(x_ref, w1t_ref, b1_ref, w2_ref, b2_ref, o_ref):
    # x_ref : VMEM (1, C, HW) float32   -- one batch element, lane-dense spatial
    # w1t_ref: VMEM (C, hidden)         -- fc[0].weight transposed
    # b1_ref : VMEM (1, hidden)
    # w2_ref : VMEM (C, hidden)         -- fc[2].weight
    # b2_ref : VMEM (C, 1)
    # o_ref  : VMEM (1, C, HW) float32
    xb = x_ref[0]                                           # (C, HW)

    # Spatial pooling (lane-axis reductions -> XLU).
    avg = jnp.mean(xb, axis=1, keepdims=True)               # (C, 1)
    mx = jnp.max(xb, axis=1, keepdims=True)                 # (C, 1)

    w1t = w1t_ref[...]                                      # (C, hidden)
    b1 = b1_ref[...]                                        # (1, hidden)
    w2 = w2_ref[...]                                        # (C, hidden)
    b2 = b2_ref[...]                                        # (C, 1)

    def mlp(v):                                             # v: (C, 1)
        # Linear(C -> hidden): h[j] = sum_c W1[j, c] * v[c] + b1[j]
        h = jnp.sum(w1t * v, axis=0, keepdims=True) + b1    # (1, hidden)
        h = jnp.maximum(h, 0.0)                             # ReLU
        # Linear(hidden -> C): o[c] = sum_j W2[c, j] * h[j] + b2[c]
        return jnp.sum(w2 * h, axis=1, keepdims=True) + b2  # (C, 1)

    scale = jax.nn.sigmoid(mlp(avg) + mlp(mx))              # (C, 1)

    # Lane-dense broadcast multiply + store.
    o_ref[0] = (xb * scale).astype(o_ref.dtype)


@jax.jit
def channel_attention(x, fc0_w, fc0_b, fc2_w, fc2_b):
    """x: (B, C, H, W) f32.
    fc0_w: (hidden, C), fc0_b: (hidden,)  -- nn.Linear(C, C//r)
    fc2_w: (C, hidden), fc2_b: (C,)       -- nn.Linear(C//r, C)
    """
    B, C, H, W = x.shape
    HW = H * W
    hidden = fc0_w.shape[0]

    x2 = x.reshape(B, C, HW)                                  # free metadata reshape
    w1t = jnp.asarray(fc0_w, jnp.float32).T                   # (C, hidden)
    b1r = jnp.asarray(fc0_b, jnp.float32).reshape(1, hidden)  # (1, hidden)
    w2m = jnp.asarray(fc2_w, jnp.float32)                     # (C, hidden)
    b2c = jnp.asarray(fc2_b, jnp.float32).reshape(C, 1)       # (C, 1)

    y2 = pl.pallas_call(
        _channel_attn_kernel,
        out_shape=jax.ShapeDtypeStruct((B, C, HW), x.dtype),
        grid_spec=pltpu.PrefetchScalarGridSpec(
            num_scalar_prefetch=0,
            grid=(B,),
            in_specs=[
                pl.BlockSpec((1, C, HW), lambda b: (b, 0, 0)),
                pl.BlockSpec((C, hidden), lambda b: (0, 0)),
                pl.BlockSpec((1, hidden), lambda b: (0, 0)),
                pl.BlockSpec((C, hidden), lambda b: (0, 0)),
                pl.BlockSpec((C, 1), lambda b: (0, 0)),
            ],
            out_specs=pl.BlockSpec((1, C, HW), lambda b: (b, 0, 0)),
        ),
        compiler_params=pltpu.CompilerParams(
            dimension_semantics=("parallel",)),
    )(x2, w1t, b1r, w2m, b2c)

    return y2.reshape(B, C, H, W)


def _reference(x, fc0_w, fc0_b, fc2_w, fc2_b):
    """Plain-JAX reference matching the PyTorch forward."""
    avg = jnp.mean(x, axis=(2, 3))                            # (B, C)
    mx = jnp.max(x, axis=(2, 3))                              # (B, C)

    def fc(v):
        h = jnp.maximum(v @ fc0_w.T + fc0_b, 0.0)
        return h @ fc2_w.T + fc2_b

    scale = jax.nn.sigmoid(fc(avg) + fc(mx))                  # (B, C)
    return x * scale[:, :, None, None]


if __name__ == "__main__":
    key = jax.random.PRNGKey(0)
    kx, kw0, kb0, kw2, kb2 = jax.random.split(key, 5)

    # channels=32, reduction=16 -> hidden=2 (channels must be >= reduction).
    B, C, H, W = 2, 32, 16, 16
    reduction = 16
    hidden = C // reduction

    x = jax.random.normal(kx, (B, C, H, W), dtype=jnp.float32)

    # Deterministic Linear params with PyTorch-style uniform bounds.
    bound0 = 1.0 / jnp.sqrt(C)
    fc0_w = jax.random.uniform(kw0, (hidden, C), minval=-bound0, maxval=bound0,
                               dtype=jnp.float32)
    fc0_b = jax.random.uniform(kb0, (hidden,), minval=-bound0, maxval=bound0,
                               dtype=jnp.float32)
    bound2 = 1.0 / jnp.sqrt(hidden)
    fc2_w = jax.random.uniform(kw2, (C, hidden), minval=-bound2, maxval=bound2,
                               dtype=jnp.float32)
    fc2_b = jax.random.uniform(kb2, (C,), minval=-bound2, maxval=bound2,
                               dtype=jnp.float32)

    y = channel_attention(x, fc0_w, fc0_b, fc2_w, fc2_b)
    jax.block_until_ready(y)

    y_ref = _reference(x, fc0_w, fc0_b, fc2_w, fc2_b)
    assert y.shape == (B, C, H, W)
    assert jnp.allclose(y, y_ref, atol=1e-5, rtol=1e-5)

    print("KERNEL_OK")
</pallas_src>

<mosaic_0001>
module attributes {stable_mosaic.version = 11 : i64} {
  func.func @_channel_attn_kernel(%arg0: i32, %arg1: memref<1x32x256xf32, #tpu.memory_space<vmem>>, %arg2: memref<32x2xf32, #tpu.memory_space<vmem>>, %arg3: memref<1x2xf32, #tpu.memory_space<vmem>>, %arg4: memref<32x2xf32, #tpu.memory_space<vmem>>, %arg5: memref<32x1xf32, #tpu.memory_space<vmem>>, %arg6: memref<1x32x256xf32, #tpu.memory_space<vmem>>) attributes {dimension_semantics = [#tpu.dimension_semantics<parallel>], iteration_bounds = array<i64: 2>, scalar_prefetch = 0 : i64, scratch_operands = 0 : i64, tpu.core_type = #tpu.core_type<tc>, window_params = [{transform_indices = @transform_0, window_bounds = array<i64: 1, 32, 256>}, {pipeline_mode = #tpu.pipeline_mode<synchronous>, transform_indices = @transform_1, window_bounds = array<i64: 32, 2>}, {pipeline_mode = #tpu.pipeline_mode<synchronous>, transform_indices = @transform_2, window_bounds = array<i64: 1, 2>}, {pipeline_mode = #tpu.pipeline_mode<synchronous>, transform_indices = @transform_3, window_bounds = array<i64: 32, 2>}, {pipeline_mode = #tpu.pipeline_mode<synchronous>, transform_indices = @transform_4, window_bounds = array<i64: 32, 1>}, {transform_indices = @transform_5, window_bounds = array<i64: 1, 32, 256>}]} {
    %c0 = arith.constant 0 : index
    %c0_0 = arith.constant 0 : index
    %c0_1 = arith.constant 0 : index
    %0 = vector.load %arg1[%c0, %c0_0, %c0_1] : memref<1x32x256xf32, #tpu.memory_space<vmem>>, vector<1x32x256xf32>
    %1 = vector.shape_cast %0 : vector<1x32x256xf32> to vector<32x256xf32>
    %cst = arith.constant dense<0.000000e+00> : vector<32xf32>
    %2 = vector.multi_reduction <add>, %1, %cst [1] : vector<32x256xf32> to vector<32xf32>
    %3 = vector.shape_cast %2 : vector<32xf32> to vector<32x1xf32>
    %cst_2 = arith.constant 2.560000e+02 : f32
    %4 = vector.broadcast %cst_2 : f32 to vector<32x1xf32>
    %5 = arith.divf %3, %4 : vector<32x1xf32>
    %cst_3 = arith.constant dense<0xFF800000> : vector<32xf32>
    %6 = vector.multi_reduction <maximumf>, %1, %cst_3 [1] : vector<32x256xf32> to vector<32xf32>
    %7 = vector.shape_cast %6 : vector<32xf32> to vector<32x1xf32>
    %c0_4 = arith.constant 0 : index
    %c0_5 = arith.constant 0 : index
    %8 = vector.load %arg2[%c0_4, %c0_5] : memref<32x2xf32, #tpu.memory_space<vmem>>, vector<32x2xf32>
    %c0_6 = arith.constant 0 : index
    %c0_7 = arith.constant 0 : index
    %9 = vector.load %arg3[%c0_6, %c0_7] : memref<1x2xf32, #tpu.memory_space<vmem>>, vector<1x2xf32>
    %c0_8 = arith.constant 0 : index
    %c0_9 = arith.constant 0 : index
    %10 = vector.load %arg4[%c0_8, %c0_9] : memref<32x2xf32, #tpu.memory_space<vmem>>, vector<32x2xf32>
    %c0_10 = arith.constant 0 : index
    %c0_11 = arith.constant 0 : index
    %11 = vector.load %arg5[%c0_10, %c0_11] : memref<32x1xf32, #tpu.memory_space<vmem>>, vector<32x1xf32>
    %12 = vector.broadcast %5 : vector<32x1xf32> to vector<32x2xf32>
    %13 = arith.mulf %8, %12 : vector<32x2xf32>
    %cst_12 = arith.constant dense<0.000000e+00> : vector<2xf32>
    %14 = vector.multi_reduction <add>, %13, %cst_12 [0] : vector<32x2xf32> to vector<2xf32>
    %15 = vector.shape_cast %14 : vector<2xf32> to vector<1x2xf32>
    %16 = arith.addf %15, %9 : vector<1x2xf32>
    %cst_13 = arith.constant 0.000000e+00 : f32
    %17 = vector.broadcast %cst_13 : f32 to vector<1x2xf32>
    %18 = arith.maximumf %16, %17 : vector<1x2xf32>
    %19 = vector.broadcast %18 : vector<1x2xf32> to vector<32x2xf32>
    %20 = arith.mulf %10, %19 : vector<32x2xf32>
    %cst_14 = arith.constant dense<0.000000e+00> : vector<32xf32>
    %21 = vector.multi_reduction <add>, %20, %cst_14 [1] : vector<32x2xf32> to vector<32xf32>
    %22 = vector.shape_cast %21 : vector<32xf32> to vector<32x1xf32>
    %23 = arith.addf %22, %11 : vector<32x1xf32>
    %24 = vector.broadcast %7 : vector<32x1xf32> to vector<32x2xf32>
    %25 = arith.mulf %8, %24 : vector<32x2xf32>
    %cst_15 = arith.constant dense<0.000000e+00> : vector<2xf32>
    %26 = vector.multi_reduction <add>, %25, %cst_15 [0] : vector<32x2xf32> to vector<2xf32>
    %27 = vector.shape_cast %26 : vector<2xf32> to vector<1x2xf32>
    %28 = arith.addf %27, %9 : vector<1x2xf32>
    %cst_16 = arith.constant 0.000000e+00 : f32
    %29 = vector.broadcast %cst_16 : f32 to vector<1x2xf32>
    %30 = arith.maximumf %28, %29 : vector<1x2xf32>
    %31 = vector.broadcast %30 : vector<1x2xf32> to vector<32x2xf32>
    %32 = arith.mulf %10, %31 : vector<32x2xf32>
    %cst_17 = arith.constant dense<0.000000e+00> : vector<32xf32>
    %33 = vector.multi_reduction <add>, %32, %cst_17 [1] : vector<32x2xf32> to vector<32xf32>
    %34 = vector.shape_cast %33 : vector<32xf32> to vector<32x1xf32>
    %35 = arith.addf %34, %11 : vector<32x1xf32>
    %36 = arith.addf %23, %35 : vector<32x1xf32>
    %37 = arith.negf %36 : vector<32x1xf32>
    %38 = math.exp %37 : vector<32x1xf32>
    %cst_18 = arith.constant 1.000000e+00 : f32
    %39 = vector.broadcast %cst_18 : f32 to vector<32x1xf32>
    %40 = arith.addf %39, %38 : vector<32x1xf32>
    %41 = arith.divf %39, %40 : vector<32x1xf32>
    %42 = vector.broadcast %41 : vector<32x1xf32> to vector<32x256xf32>
    %43 = arith.mulf %1, %42 : vector<32x256xf32>
    %c0_19 = arith.constant 0 : index
    %c0_20 = arith.constant 0 : index
    %c0_21 = arith.constant 0 : index
    %44 = vector.load %arg6[%c0_19, %c0_20, %c0_21] : memref<1x32x256xf32, #tpu.memory_space<vmem>>, vector<1x32x256xf32>
    %45 = vector.shape_cast %44 : vector<1x32x256xf32> to vector<32x256xf32>
    %46 = vector.shape_cast %43 : vector<32x256xf32> to vector<1x32x256xf32>
    tpu.vector_store %arg6[%c0_19, %c0_20, %c0_21], %46 {strides = array<i32>} : memref<1x32x256xf32, #tpu.memory_space<vmem>>, vector<1x32x256xf32>,
    return
  }
  func.func @transform_0(%arg0: i32) -> (i32, i32, i32) {
    %c0_i32 = arith.constant 0 : i32
    %c0_i32_0 = arith.constant 0 : i32
    %c0_i32_1 = arith.constant 0 : i32
    return %arg0, %c0_i32, %c0_i32_0 : i32, i32, i32
  }
  func.func @transform_1(%arg0: i32) -> (i32, i32) {
    %c0_i32 = arith.constant 0 : i32
    %c0_i32_0 = arith.constant 0 : i32
    %c0_i32_1 = arith.constant 0 : i32
    return %c0_i32, %c0_i32_0 : i32, i32
  }
  func.func @transform_2(%arg0: i32) -> (i32, i32) {
    %c0_i32 = arith.constant 0 : i32
    %c0_i32_0 = arith.constant 0 : i32
    %c0_i32_1 = arith.constant 0 : i32
    return %c0_i32, %c0_i32_0 : i32, i32
  }
  func.func @transform_3(%arg0: i32) -> (i32, i32) {
    %c0_i32 = arith.constant 0 : i32
    %c0_i32_0 = arith.constant 0 : i32
    %c0_i32_1 = arith.constant 0 : i32
    return %c0_i32, %c0_i32_0 : i32, i32
  }
  func.func @transform_4(%arg0: i32) -> (i32, i32) {
    %c0_i32 = arith.constant 0 : i32
    %c0_i32_0 = arith.constant 0 : i32
    %c0_i32_1 = arith.constant 0 : i32
    return %c0_i32, %c0_i32_0 : i32, i32
  }
  func.func @transform_5(%arg0: i32) -> (i32, i32, i32) {
    %c0_i32 = arith.constant 0 : i32
    %c0_i32_0 = arith.constant 0 : i32
    %c0_i32_1 = arith.constant 0 : i32
    return %arg0, %c0_i32, %c0_i32_0 : i32, i32, i32
  }
}

</mosaic_0001>

<bundles_post_ra>
// kernel: channel_attention.1
= control target key start
LH: loop header
LB: loop body
LE: loop exit
PB: predicated region body
PF: predicated region fallthrough
CT: control target
= control target key end

     0   :  { %s564_s18 = smov 0   ;;  %s683_s0 = inlined_call_operand.vmem [shape: f32[2,32,256], index: 0, kind: input, shape index: {}]   ;;  %s684_s1 = inlined_call_operand.vmem [shape: f32[32,2], index: 1, kind: input, shape index: {}]   ;;  %s685_s2 = inlined_call_operand.vmem [shape: f32[1,2], index: 2, kind: input, shape index: {}]   ;;  %s686_s3 = inlined_call_operand.vmem [shape: f32[32,2], index: 3, kind: input, shape index: {}]   ;;  %s687_s4 = inlined_call_operand.vmem [shape: f32[32,1], index: 4, kind: input, shape index: {}]   ;;  %s688_s5 = inlined_call_operand.vmem [shape: f32[2,32,256], index: 5, kind: output, shape index: {}]  }
   0x1 LB: > { %s481_s19 = sadd.s32 4294967295, %s531_s18   ;;  %p485_p0 = scmp.ge.s32.totalorder %s531_s18, 1  ;;  %s531_s18 = sphi %s564_s18, %s15_s18  }
   0x2   : > { %p187_p1 = scmp.lt.s32.totalorder %s531_s18, 3 }
   0x4   : > { %p188_p2 = pnand %p485_p0, %p187_p1 }
   0x5   : > { %p215_p3 = scmp.lt.s32.totalorder (!%p188_p2), %s481_s19, 1  ;;  %v262_v19 = vld [vmem:[%s684_s1] sm:$0xff] (!%p188_p2)  ;;  %v263_v23 = vld [vmem:[%s684_s1 + $0x8] sm:$0xff] (!%p188_p2)  ;;  %v264_v24 = vld [vmem:[%s684_s1 + $0x10] sm:$0xff] (!%p188_p2)  ;;  %vm279_vm0 = vcmask (!%p188_p2), 15360   ;;  %v295_v62 = vlaneseq (!%p188_p2) }
   0x6   : > { %191 = sbr.rel (%p188_p2) target bundleno = 522 (0x20a), region = 40  ;;  %v265_v30 = vld [vmem:[%s684_s1 + $0x18] sm:$0xff] (!%p188_p2)  ;;  %v266_v63 = vld [vmem:[%s685_s2] sm:$0x1] (!%p188_p2) }
   0xd   : > { %s690_s19 = smov (!%p215_p3, %s481_s19), 1 }
   0xe   : > { %s496_s20 = sshll.u32 %s690_s19, 6 }
   0xf   : > { %s219_s23 = scalar_lea.vmem %s683_s0, %s496_s20  ;;  %s224_s30 = scalar_lea.vmem %s688_s5, %s496_s20 }
  0x10   : > { %v580_v0 = vld [vmem:[%s219_s23 + $0x20] sm:$0xff]  ;;  %v582_v1 = vld [vmem:[%s219_s23 + $0x28] sm:$0xff]  ;;  %v590_v5 = vld [vmem:[%s219_s23 + $0x10] sm:$0xff] }
  0x11   : > { %v584_v2 = vld [vmem:[%s219_s23] sm:$0xff]  ;;  %v239_v3 = vadd.f32 %v582_v1, %v580_v0  ;;  %v588_v4 = vld [vmem:[%s219_s23 + $0x8] sm:$0xff]  ;;  %v592_v6 = vld [vmem:[%s219_s23 + $0x18] sm:$0xff]  ;;  %v256_v15 = vmax.f32 %v580_v0, %v582_v1 }
  0x12   : > { %v233_v7 = vadd.f32 %v588_v4, %v584_v2  ;;  %v250_v8 = vmax.f32 %v584_v2, %v588_v4  ;;  %v236_v9 = vadd.f32 %v592_v6, %v590_v5  ;;  %v600_v10 = vld [vmem:[%s219_s23 + $0x30] sm:$0xff]  ;;  %v602_v11 = vld [vmem:[%s219_s23 + $0x38] sm:$0xff]  ;;  %v253_v13 = vmax.f32 %v590_v5, %v592_v6 }
  0x13   : > { %240 = vadd.xlane.f32.xlu1 %v239_v3  ;;  %v242_v12 = vadd.f32 %v602_v11, %v600_v10  ;;  %v259_v14 = vmax.f32 %v600_v10, %v602_v11 }
  0x14   : > { %234 = vadd.xlane.f32.xlu0 %v233_v7 }
  0x17   : > { %251 = vmax.xlane.f32.xlu1 %v250_v8 }
  0x18   : > { %237 = vadd.xlane.f32.xlu0 %v236_v9  ;;  %v296_v9 = vshrl.u32 %v295_v62, 7 }
  0x1b   : > { %243 = vadd.xlane.f32.xlu1 %v242_v12 }
  0x1c   : > { %254 = vmax.xlane.f32.xlu0 %v253_v13 }
  0x1f   : > { %260 = vmax.xlane.f32.xlu1 %v259_v14 }
  0x20   : > { %257 = vmax.xlane.f32.xlu0 %v256_v15  ;;  %v297_v15 = vsub.s32 0, %v296_v9 }
  0xa0   : > { %v241_v16 = vpop.xlane.xlu1 %240 }
  0xa1   : > { %v235_v17 = vpop.xlane.xlu0 %234  ;;  %v248_v20 = vmul.f32 0.00390625, %v241_v16 }
  0xa2   : > { %v246_v18 = vmul.f32 0.00390625, %v235_v17 }
  0xa3   : > { %v277_v29 = vmul.f32 %v264_v24, %v248_v20  ;;  %v268_v20 = vld [vmem:[%s686_s3 + $0x8] sm:$0xff] }
  0xa4   : > { %v252_v21 = vpop.xlane.xlu1 %251  ;;  %v275_v25 = vmul.f32 %v262_v19, %v246_v18 }
  0xa5   : > { %v238_v22 = vpop.xlane.xlu0 %237  ;;  %v319_v34 = vmul.f32 %v262_v19, %v252_v21  ;;  %v283_v40 = vsel %vm279_vm0, %v277_v29, 0.0  ;;  %v267_v21 = vld [vmem:[%s686_s3] sm:$0xff]  ;;  %v269_v29 = vld [vmem:[%s686_s3 + $0x10] sm:$0xff] }
  0xa6   : > { %v247_v26 = vmul.f32 0.00390625, %v238_v22  ;;  %v280_v33 = vsel %vm279_vm0, %v275_v25, 0.0 }
  0xa7   : > { %v323_v46 = vsel %vm279_vm0, %v319_v34, 0.0 }
  0xa8   : > { %v244_v27 = vpop.xlane.xlu1 %243  ;;  %v276_v28 = vmul.f32 %v263_v23, %v247_v26 }
  0xa9   : > { %v249_v31 = vmul.f32 0.00390625, %v244_v27  ;;  %v255_v32 = vpop.xlane.xlu0 %254 }
  0xaa   : > { %v281_v35 = vsel %vm279_vm0, %v276_v28, 0.0  ;;  %v320_v36 = vmul.f32 %v263_v23, %v255_v32  ;;  %v270_v28 = vld [vmem:[%s686_s3 + $0x18] sm:$0xff] }
  0xab   : > { %v282_v37 = vadd.f32 %v281_v35, %v280_v33  ;;  %v278_v38 = vmul.f32 %v265_v30, %v249_v31 }
  0xac   : > { %v324_v39 = vsel %vm279_vm0, %v320_v36, 0.0  ;;  %v261_v41 = vpop.xlane.xlu1 %260 }
  0xad   : > { %v284_v42 = vadd.f32 %v283_v40, %v282_v37  ;;  %v258_v43 = vpop.xlane.xlu0 %257  ;;  %v285_v44 = vsel %vm279_vm0, %v278_v38, 0.0  ;;  %v322_v45 = vmul.f32 %v265_v30, %v261_v41  ;;  %v325_v48 = vadd.f32 %v324_v39, %v323_v46 }
  0xae   : > { %v321_v47 = vmul.f32 %v264_v24, %v258_v43  ;;  %v533_v40 = vmov 0   ;;  %v272_v43 = vld [vmem:[%s687_s4 + $0x8] sm:$0xff] }
  0xaf   : > { %v286_v49 = vadd.f32 %v285_v44, %v284_v42  ;;  %v328_v51 = vsel %vm279_vm0, %v322_v45, 0.0  ;;  %508 = vset.pattern.permute.xlu1 %v533_v40  ;;  %507 = vset.pattern.permute.xlu0 %v533_v40  ;;  %v271_v44 = vld [vmem:[%s687_s4] sm:$0xff] }
  0xb0   : > { %v326_v50 = vsel %vm279_vm0, %v321_v47, 0.0 }
  0xb1   : > { %v327_v52 = vadd.f32 %v326_v50, %v325_v48  ;;  %v287_v53 = vrot.slane %v286_v49, 4 }
  0xb3   : > { %v288_v54 = vadd.f32 %v287_v53, %v286_v49  ;;  %v329_v55 = vadd.f32 %v328_v51, %v327_v52 }
  0xb5   : > { %v289_v56 = vrot.slane %v288_v54, 2  ;;  %v330_v57 = vrot.slane %v329_v55, 4 }
  0xb7   : > { %v290_v58 = vadd.f32 %v289_v56, %v288_v54  ;;  %v331_v59 = vadd.f32 %v330_v57, %v329_v55  ;;  %v274_v57 = vld [vmem:[%s687_s4 + $0x18] sm:$0xff] }
  0xb9   : > { %v291_v60 = vrot.slane %v290_v58, 1  ;;  %v332_v61 = vrot.slane %v331_v59, 2 }
  0xbb   : > { %v292_v3 = vadd.f32 %v291_v60, %v290_v58  ;;  %v333_v7 = vadd.f32 %v332_v61, %v331_v59  ;;  %v273_v58 = vld [vmem:[%s687_s4 + $0x10] sm:$0xff] }
  0xbd   : > { %v334_v8 = vrot.slane %v333_v7, 1  ;;  %v293_v12 = vadd.f32 %v292_v3, %v266_v63 }
  0xbf   : > { %v335_v13 = vadd.f32 %v334_v8, %v333_v7  ;;  %v294_v16 = vmax.f32 %v293_v12, 0.0 }
  0xc1   : > { %v336_v14 = vadd.f32 %v335_v13, %v266_v63  ;;  %v298_v19 = vrot.slane %v294_v16, %v297_v15 }
  0xc3   : > { %v337_v17 = vmax.f32 %v336_v14, 0.0  ;;  %v300_v26 = vmul.f32 %v298_v19, %v268_v20  ;;  %v299_v27 = vmul.f32 %v298_v19, %v267_v21  ;;  %v302_v32 = vmul.f32 %v298_v19, %v270_v28 }
  0xc4   : > { %v301_v33 = vmul.f32 %v298_v19, %v269_v29 }
  0xc5   : > { %v341_v18 = vrot.slane %v337_v17, %v297_v15  ;;  %v306_v30 = vsel %vm279_vm0, %v300_v26, 0.0  ;;  %v303_v31 = vsel %vm279_vm0, %v299_v27, 0.0  ;;  %v312_v34 = vsel %vm279_vm0, %v302_v32, 0.0 }
  0xc6   : > { %v309_v35 = vsel %vm279_vm0, %v301_v33, 0.0 }
  0xc7   : > { %v343_v22 = vmul.f32 %v341_v18, %v268_v20  ;;  %v342_v23 = vmul.f32 %v341_v18, %v267_v21  ;;  %v345_v36 = vmul.f32 %v341_v18, %v270_v28  ;;  %v344_v37 = vmul.f32 %v341_v18, %v269_v29 }
  0xc9   : > { %v349_v24 = vsel %vm279_vm0, %v343_v22, 0.0  ;;  %v346_v25 = vsel %vm279_vm0, %v342_v23, 0.0  ;;  %v355_v38 = vsel %vm279_vm0, %v345_v36, 0.0  ;;  %v352_v39 = vsel %vm279_vm0, %v344_v37, 0.0 }
  0xca   : > { %350 = vadd.xlane.f32.xlu1 %v349_v24  ;;  %347 = vadd.xlane.f32.xlu0 %v346_v25 }
  0xce   : > { %307 = vadd.xlane.f32.xlu1 %v306_v30  ;;  %304 = vadd.xlane.f32.xlu0 %v303_v31 }
  0xd2   : > { %313 = vadd.xlane.f32.xlu1 %v312_v34  ;;  %310 = vadd.xlane.f32.xlu0 %v309_v35 }
  0xd6   : > { %356 = vadd.xlane.f32.xlu1 %v355_v38  ;;  %353 = vadd.xlane.f32.xlu0 %v352_v39 }
 0x157   : > { %v351_v41 = vpop.xlane.xlu1 %350  ;;  %v348_v42 = vpop.xlane.xlu0 %347 }
 0x158   : > { %v359_v47 = vadd.f32 %v351_v41, %v272_v43  ;;  %v358_v48 = vadd.f32 %v348_v42, %v271_v44 }
 0x15b   : > { %v308_v45 = vpop.xlane.xlu1 %307  ;;  %v305_v46 = vpop.xlane.xlu0 %304 }
 0x15c   : > { %v316_v49 = vadd.f32 %v308_v45, %v272_v43  ;;  %v315_v50 = vadd.f32 %v305_v46, %v271_v44 }
 0x15e   : > { %v363_v51 = vadd.f32 %v359_v47, %v316_v49  ;;  %v362_v52 = vadd.f32 %v358_v48, %v315_v50 }
 0x15f   : > { %v314_v53 = vpop.xlane.xlu1 %313  ;;  %v311_v54 = vpop.xlane.xlu0 %310 }
 0x160   : > { %v491_v55 = vmul.f32 -1.442695, %v363_v51  ;;  %v490_v56 = vmul.f32 -1.442695, %v362_v52  ;;  %v318_v61 = vadd.f32 %v314_v53, %v274_v57  ;;  %v317_v62 = vadd.f32 %v311_v54, %v273_v58 }
 0x162   : > { %509 = vpow2.f32 %v491_v55 }
 0x163   : > { %511 = vpow2.f32 %v490_v56  ;;  %v357_v59 = vpop.xlane.xlu1 %356  ;;  %v354_v60 = vpop.xlane.xlu0 %353 }
 0x164   : > { %v361_v63 = vadd.f32 %v357_v59, %v274_v57  ;;  %v360_v3 = vadd.f32 %v354_v60, %v273_v58 }
 0x166   : > { %v365_v7 = vadd.f32 %v361_v63, %v318_v61  ;;  %v364_v8 = vadd.f32 %v360_v3, %v317_v62 }
 0x168   : > { %v493_v9 = vmul.f32 -1.442695, %v365_v7  ;;  %v492_v12 = vmul.f32 -1.442695, %v364_v8 }
 0x16a   : > { %513 = vpow2.f32 %v493_v9 }
 0x16b   : > { %515 = vpow2.f32 %v492_v12 }
 0x16c   : > { %v510_v13 = vpop.eup %509 }
 0x16d   : > { %v512_v14 = vpop.eup %511  ;;  %v379_v15 = vadd.f32 1.0, %v510_v13 }
 0x16e   : > { %v378_v16 = vadd.f32 1.0, %v512_v14 }
 0x16f   : > { %517 = vrcp.f32 %v379_v15 }
 0x170   : > { %519 = vrcp.f32 %v378_v16 }
 0x174   : > { %v514_v17 = vpop.eup %513 }
 0x175   : > { %v516_v18 = vpop.eup %515  ;;  %v381_v20 = vadd.f32 1.0, %v514_v17 }
 0x176   : > { %v380_v19 = vadd.f32 1.0, %v516_v18 }
 0x178   : > { %521 = vrcp.f32 %v380_v19 }
 0x179   : > { %v518_v21 = vpop.eup %517  ;;  %523 = vrcp.f32 %v381_v20 }
 0x17a   : > { %v520_v22 = vpop.eup %519  ;;  %397 = vperm.xlu1 %508, %v518_v21  }
 0x17b   : > { %392 = vperm.xlu0 %507, %v520_v22  }
 0x182   : > { %v522_v23 = vpop.eup %521 }
 0x183   : > { %402 = vperm.xlu1 %508, %v522_v23   ;;  %v524_v24 = vpop.eup %523 }
 0x187   : > { %407 = vperm.xlu1 %508, %v524_v24  }
 0x1f9   : > { %v398_v25 = vpop.permute.xlu1 %397 }
 0x1fa   : > { %v412_v26 = vmul.f32 %v398_v25, %v590_v5  ;;  %v413_v27 = vmul.f32 %v398_v25, %v592_v6  ;;  %v393_v28 = vpop.permute.xlu0 %392 }
 0x1fb   : > { %v410_v29 = vmul.f32 %v393_v28, %v584_v2  ;;  %v411_v30 = vmul.f32 %v393_v28, %v588_v4 }
 0x1fc   : > { %420 = vst [vmem:[%s224_s30 + $0x10] sm:$0xff] %v412_v26  ;;  %421 = vst [vmem:[%s224_s30 + $0x18] sm:$0xff] %v413_v27 }
 0x1fd   : > { %418 = vst [vmem:[%s224_s30] sm:$0xff] %v410_v29  ;;  %419 = vst [vmem:[%s224_s30 + $0x8] sm:$0xff] %v411_v30 }
 0x202   : > { %v403_v31 = vpop.permute.xlu1 %402 }
 0x203   : > { %v414_v32 = vmul.f32 %v403_v31, %v580_v0  ;;  %v415_v33 = vmul.f32 %v403_v31, %v582_v1 }
 0x205   : > { %422 = vst [vmem:[%s224_s30 + $0x20] sm:$0xff] %v414_v32  ;;  %423 = vst [vmem:[%s224_s30 + $0x28] sm:$0xff] %v415_v33 }
 0x206   : > { %v408_v34 = vpop.permute.xlu1 %407 }
 0x207   : > { %v416_v5 = vmul.f32 %v408_v34, %v600_v10  ;;  %v417_v6 = vmul.f32 %v408_v34, %v602_v11 }
 0x209   : > { %424 = vst [vmem:[%s224_s30 + $0x30] sm:$0xff] %v416_v5  ;;  %425 = vst [vmem:[%s224_s30 + $0x38] sm:$0xff] %v417_v6 }
 0x20a PF: > { %s15_s18 = sadd.s32 1, %s531_s18  }
 0x20b   : > { %p12_p4 = scmp.ge.s32.totalorder %s15_s18, 4  }
 0x20d   :  { %14 = sbr.rel (!%p12_p4) target bundleno = 1 (0x1), region = 70 }

</bundles_post_ra>
